<compile_context>
chip_gen: v7x
topology: tpu7x:2x2x1
jax: 0.10.0
libtpu: 0.0.40
codegen_flags: <defaults>
</compile_context>

<pallas_src>
import functools

import jax
import jax.numpy as jnp
from jax.experimental import pallas as pl
from jax.experimental.pallas import tpu as pltpu


def _round_up(x, m):
    return ((x + m - 1) // m) * m


def _tv_kernel(masks_ref, x_ref, out_ref, *, h, w, bpb, p,
               needs_tail_mask, compute_dtype):
    """masks_ref: (2, H*W) compute_dtype (row 0 = horizontal-neighbor valid,
    row 1 = vertical-neighbor valid).  x_ref: (bpb, H*W) input dtype.
    out_ref: (8, 128) f32 holding this block's partial sum (broadcast)."""
    hw = h * w
    x = x_ref[...].astype(compute_dtype)

    if needs_tail_mask:
        # Zero out planes past the true plane count p (the tail block reads
        # out-of-bounds rows whose contents are undefined).  Only traced when
        # P % bpb != 0.
        plane = (pl.program_id(0) * bpb
                 + jax.lax.broadcasted_iota(jnp.int32, (bpb, 1), 0))
        x = jnp.where(plane < p, x, jnp.zeros_like(x))

    partial = jnp.zeros((), jnp.float32)
    if w > 1:
        # horizontal neighbor: flat index i vs i+1 (same image row).
        # roll(x, hw-1) == roll(x, -1): result[i] = x[i+1]; wrap masked by row 0.
        dh = x - pltpu.roll(x, shift=hw - 1, axis=1)
        partial = partial + jnp.sum(
            (jnp.abs(dh) * masks_ref[0:1, :]).astype(jnp.float32))
    if h > 1:
        # vertical neighbor: flat index i vs i+w (same column, next image row);
        # wrap masked by row 1.
        dv = x - pltpu.roll(x, shift=hw - w, axis=1)
        partial = partial + jnp.sum(
            (jnp.abs(dv) * masks_ref[1:2, :]).astype(jnp.float32))

    out_ref[...] = jnp.full(out_ref.shape, partial, dtype=jnp.float32)


def total_variation_loss(inp, total_variation_weight, *, target_block_bytes=2 << 20):
    """Mirrors TotalVariationRegularizationLoss.forward: returns (inp, loss)."""
    n, c, h, w = inp.shape
    p, hw = n * c, h * w
    x = inp.reshape(p, hw)

    # ---- compute dtype: bf16-native VPUs on v6e/v7x; v5e has no bf16 VPU ----
    try:
        kind = jax.devices()[0].device_kind.lower()
    except Exception:  # pragma: no cover
        kind = ""
    is_v5e = ("v5e" in kind) or ("v5 lite" in kind) or ("v5lite" in kind)
    if inp.dtype == jnp.bfloat16 and not is_v5e:
        compute_dtype = jnp.bfloat16
    else:
        compute_dtype = jnp.float32

    # ---- per-generation VMEM capacity ----
    try:
        vmem_cap = int(pltpu.get_tpu_info().vmem_capacity_bytes)
    except Exception:  # pragma: no cover
        vmem_cap = 64 << 20  # conservative (v7x physical VMEM)

    in_itemsize = jnp.dtype(inp.dtype).itemsize
    cs_itemsize = jnp.dtype(compute_dtype).itemsize

    # planes per block: multiple of 8 sublanes, ~target_block_bytes of input
    planes_fit = max(1, target_block_bytes // max(1, hw * in_itemsize))
    bpb = max(8, (planes_fit // 8) * 8)
    bpb = min(bpb, _round_up(p, 8))
    if p > 8:
        # keep >= 2 blocks so both v7x TensorCores (and megacore) get work
        bpb = min(bpb, _round_up((p + 1) // 2, 8))

    def _footprint(b):
        in_blocks = 2 * b * hw * in_itemsize          # double-buffered input
        temps = 3 * b * hw * max(cs_itemsize, 4)      # elementwise temporaries
        masks_buf = 2 * 8 * hw * cs_itemsize          # (2,hw) mask, sublane-padded, x2 buffers
        outs = 2 * 8 * 128 * 4
        return in_blocks + temps + masks_buf + outs

    budget = min(28 << 20, vmem_cap // 2)
    while bpb > 8 and _footprint(bpb) > budget:
        bpb = max(8, ((bpb // 2) // 8) * 8)
    # TODO(synk): if even an 8-plane block (or the 8*hw-padded mask buffer)
    # exceeds the VMEM budget (very large H*W planes), tile along H with a
    # 1-row halo instead of whole-plane rows.

    num_blocks = pl.cdiv(p, bpb)
    needs_tail_mask = (p % bpb) != 0

    # precomputed neighbor-validity masks (replaces in-kernel iota/cmp/select)
    flat = jnp.arange(hw, dtype=jnp.int32)
    mask_h = (flat % w) < (w - 1)       # 0 at the last column of each image row
    mask_v = flat < (h - 1) * w         # 0 on the last image row
    masks = jnp.stack([mask_h, mask_v], axis=0).astype(compute_dtype)  # (2, hw)

    kernel = functools.partial(
        _tv_kernel, h=h, w=w, bpb=bpb, p=p,
        needs_tail_mask=needs_tail_mask, compute_dtype=compute_dtype)

    vmem_limit = int(min(max(vmem_cap // 2, 16 << 20),
                         max(32 << 20, _footprint(bpb) + (4 << 20))))

    partial_blocks = pl.pallas_call(
        kernel,
        out_shape=jax.ShapeDtypeStruct((8, 128 * num_blocks), jnp.float32),
        grid=(num_blocks,),
        in_specs=[
            pl.BlockSpec((2, hw), lambda i: (0, 0)),    # constant mask block
            pl.BlockSpec((bpb, hw), lambda i: (i, 0)),  # planes for this step
        ],
        out_specs=pl.BlockSpec((8, 128), lambda i: (0, i)),
        compiler_params=pltpu.CompilerParams(
            dimension_semantics=("parallel",),          # disjoint outputs per step
            vmem_limit_bytes=vmem_limit,
        ),
    )(masks, x)

    # one representative element per (8, 128) block holds that block's partial
    partials = partial_blocks.reshape(8, num_blocks, 128)[0, :, 0]
    loss = jnp.sum(partials) * jnp.asarray(total_variation_weight, jnp.float32)
    return inp, loss


def _reference_tv_loss(inp, total_variation_weight):
    dh = jnp.sum(jnp.abs(inp[:, :, :, :-1] - inp[:, :, :, 1:]))
    dv = jnp.sum(jnp.abs(inp[:, :, :-1, :] - inp[:, :, 1:, :]))
    return (dh + dv) * total_variation_weight


if __name__ == "__main__":
    key = jax.random.PRNGKey(0)
    # small NCHW input consistent with the module's forward
    x = jax.random.normal(key, (2, 4, 16, 16), dtype=jnp.float32)
    tv_weight = 1e-4  # deterministic "parameter" of the module

    out, loss = total_variation_loss(x, tv_weight)
    out = jax.block_until_ready(out)
    loss = jax.block_until_ready(loss)

    ref = _reference_tv_loss(x, tv_weight)
    assert out.shape == x.shape and bool(jnp.allclose(out, x)), \
        "forward must return inp unchanged"
    assert bool(jnp.allclose(loss, ref, rtol=1e-5, atol=1e-6)), (loss, ref)

    print("KERNEL_OK")
</pallas_src>

<mosaic_0001>
module attributes {stable_mosaic.version = 11 : i64} {
  func.func @_tv_kernel(%arg0: i32, %arg1: memref<2x256xf32, #tpu.memory_space<vmem>>, %arg2: memref<8x256xf32, #tpu.memory_space<vmem>>, %arg3: memref<8x128xf32, #tpu.memory_space<vmem>>) attributes {dimension_semantics = [#tpu.dimension_semantics<parallel>], iteration_bounds = array<i64: 1>, scalar_prefetch = 0 : i64, scratch_operands = 0 : i64, tpu.core_type = #tpu.core_type<tc>, window_params = [{pipeline_mode = #tpu.pipeline_mode<synchronous>, transform_indices = @transform_0, window_bounds = array<i64: 2, 256>}, {transform_indices = @transform_1, window_bounds = array<i64: 8, 256>}, {transform_indices = @transform_2, window_bounds = array<i64: 8, 128>}]} {
    %c0 = arith.constant 0 : index
    %c0_0 = arith.constant 0 : index
    %0 = vector.load %arg2[%c0, %c0_0] : memref<8x256xf32, #tpu.memory_space<vmem>>, vector<8x256xf32>
    %c255_i32 = arith.constant 255 : i32
    %1 = tpu.dynamic_rotate %0 by %c255_i32 dim 1 : vector<8x256xf32>, i32 -> vector<8x256xf32>
    %2 = arith.subf %0, %1 : vector<8x256xf32>
    %3 = math.absf %2 : vector<8x256xf32>
    %c0_1 = arith.constant 0 : index
    %c0_2 = arith.constant 0 : index
    %4 = vector.load %arg1[%c0_1, %c0_2] : memref<2x256xf32, #tpu.memory_space<vmem>>, vector<1x256xf32>
    %5 = vector.broadcast %4 : vector<1x256xf32> to vector<8x256xf32>
    %6 = arith.mulf %3, %5 : vector<8x256xf32>
    %7 = vector.shape_cast %6 : vector<8x256xf32> to vector<1x8x256xf32>
    %cst = arith.constant dense<0.000000e+00> : vector<1xf32>
    %8 = vector.multi_reduction <add>, %7, %cst [1, 2] : vector<1x8x256xf32> to vector<1xf32>
    %9 = vector.shape_cast %8 : vector<1xf32> to vector<1x1x1xf32>
    %10 = vector.extract %9[0, 0, 0] : f32 from vector<1x1x1xf32>
    %cst_3 = arith.constant 0.000000e+00 : f32
    %11 = arith.addf %cst_3, %10 : f32
    %c240_i32 = arith.constant 240 : i32
    %12 = tpu.dynamic_rotate %0 by %c240_i32 dim 1 : vector<8x256xf32>, i32 -> vector<8x256xf32>
    %13 = arith.subf %0, %12 : vector<8x256xf32>
    %14 = math.absf %13 : vector<8x256xf32>
    %c1 = arith.constant 1 : index
    %c0_4 = arith.constant 0 : index
    %15 = vector.load %arg1[%c1, %c0_4] : memref<2x256xf32, #tpu.memory_space<vmem>>, vector<1x256xf32>
    %16 = vector.broadcast %15 : vector<1x256xf32> to vector<8x256xf32>
    %17 = arith.mulf %14, %16 : vector<8x256xf32>
    %18 = vector.shape_cast %17 : vector<8x256xf32> to vector<1x8x256xf32>
    %cst_5 = arith.constant dense<0.000000e+00> : vector<1xf32>
    %19 = vector.multi_reduction <add>, %18, %cst_5 [1, 2] : vector<1x8x256xf32> to vector<1xf32>
    %20 = vector.shape_cast %19 : vector<1xf32> to vector<1x1x1xf32>
    %21 = vector.extract %20[0, 0, 0] : f32 from vector<1x1x1xf32>
    %22 = arith.addf %11, %21 : f32
    %23 = vector.broadcast %22 : f32 to vector<8x128xf32>
    %c0_6 = arith.constant 0 : index
    %c0_7 = arith.constant 0 : index
    %24 = vector.load %arg3[%c0_6, %c0_7] : memref<8x128xf32, #tpu.memory_space<vmem>>, vector<8x128xf32>
    tpu.vector_store %arg3[%c0_6, %c0_7], %23 {strides = array<i32>} : memref<8x128xf32, #tpu.memory_space<vmem>>, vector<8x128xf32>,
    return
  }
  func.func @transform_0(%arg0: i32) -> (i32, i32) {
    %c0_i32 = arith.constant 0 : i32
    %c0_i32_0 = arith.constant 0 : i32
    %c0_i32_1 = arith.constant 0 : i32
    return %c0_i32, %c0_i32_0 : i32, i32
  }
  func.func @transform_1(%arg0: i32) -> (i32, i32) {
    %c0_i32 = arith.constant 0 : i32
    %c0_i32_0 = arith.constant 0 : i32
    return %arg0, %c0_i32 : i32, i32
  }
  func.func @transform_2(%arg0: i32) -> (i32, i32) {
    %c0_i32 = arith.constant 0 : i32
    %c0_i32_0 = arith.constant 0 : i32
    return %c0_i32, %arg0 : i32, i32
  }
}

</mosaic_0001>

<bundles_post_ra>
// kernel: tpu_custom_call.1
= control target key start
LH: loop header
LB: loop body
LE: loop exit
PB: predicated region body
PF: predicated region fallthrough
CT: control target
= control target key end

     0   :  { %7 = vsyncpa [#allocation3], 0  ;;  %s268_s0 = inlined_call_operand.hbm [shape: f32[2,256], index: 0, kind: input, shape index: {}]   ;;  %s269_s1 = inlined_call_operand.hbm [shape: f32[8,256], index: 1, kind: input, shape index: {}]   ;;  %s270_s2 = inlined_call_operand.hbm [shape: f32[8,128], index: 2, kind: output, shape index: {}]  }
   0x1   :  { %8 = vsyncpa [#allocation6], 0 }
   0x2   :  { %9 = vsyncpa [#allocation4], 0  ;;  %s212_s9 = smov [#allocation2]   ;;  %s213_s11 = smov [#allocation5]  }
   0x3   :  { %s16_s10 = sshll.u32 %s212_s9, 4  ;;  %s26_s12 = sshll.u32 %s213_s11, 4  ;;  %s17_s10 = int_to_ptr.vmem [resolvable:$true] %s16_s10  ;;  %s27_s12 = int_to_ptr.vmem [resolvable:$true] %s26_s12 }
   0x4   :  { %s140_s15 = scalar_lea.hbm %s268_s0, 64 }
   0x5   :  { %p141_p0 = scmp.ne.s32.totalorder %s268_s0, %s140_s15  ;;  %p144_p1 = scmp.lt.u32.totalorder %s140_s15, %s268_s0 }
   0x7   :  { %p146_p2 = pnand %p144_p1, %p141_p0 }
   0x9   :  { %149 = shalt.err (!%p146_p2)
}
   0xa   :  { %s150_s20 = scalar_lea.vmem %s17_s10, 64  ;;  %p155_p4 = scmp.lt.s32.totalorder %s17_s10, %s17_s10 }
   0xb   :  { %p151_p3 = scmp.ne.s32.totalorder %s17_s10, %s150_s20  ;;  %p156_p5 = scmp.lt.s32.totalorder %s150_s20, %s150_s20 }
   0xd   :  { %p157_p6 = por %p156_p5, %p155_p4 }
   0xf   :  { %p158_p7 = pnand %p157_p6, %p151_p3 }
  0x11   :  { %161 = shalt.err (!%p158_p7)
}
  0x12   :  { %19 = dma.hbm_to_vmem [thread:$0]  %s268_s0, 64, %s17_s10, [#allocation3]  }
  0x13   :  { %s162_s25 = scalar_lea.hbm %s269_s1, 256 }
  0x14   :  { %p163_p8 = scmp.ne.s32.totalorder %s269_s1, %s162_s25  ;;  %p166_p9 = scmp.lt.u32.totalorder %s162_s25, %s269_s1 }
  0x16   :  { %p168_p10 = pnand %p166_p9, %p163_p8 }
  0x18   :  { %171 = shalt.err (!%p168_p10)
}
  0x19   :  { %s172_s30 = scalar_lea.vmem %s27_s12, 256  ;;  %p177_p12 = scmp.lt.s32.totalorder %s27_s12, %s27_s12 }
  0x1a   :  { %p173_p11 = scmp.ne.s32.totalorder %s27_s12, %s172_s30  ;;  %p178_p13 = scmp.lt.s32.totalorder %s172_s30, %s172_s30 }
  0x1c   :  { %p179_p0 = por %p178_p13, %p177_p12 }
  0x1e   :  { %p180_p1 = pnand %p179_p0, %p173_p11 }
  0x20   :  { %183 = shalt.err (!%p180_p1)
}
  0x21   :  { %29 = dma.hbm_to_vmem [thread:$0]  %s269_s1, 256, %s27_s12, [#allocation6]  }
  0x22   :  { %206 = dma.done.wait [#allocation3], 64  }
  0x23   :  { %207 = vsyncadd [#allocation3], 4294967232 }
  0x24   :  { %208 = dma.done.wait [#allocation6], 256  }
  0x25   :  { %209 = vsyncadd [#allocation6], 4294967040  ;;  %v36_v0 = vld [vmem:[#allocation5] sm:$0xff]  ;;  %s214_s4 = smov 112   ;;  %s215_s5 = smov 127   ;;  %v37_v1 = vld [vmem:[#allocation5 + $0x8] sm:$0xff]  ;;  %v42_v2 = vlaneseq }
  0x26   :  { %76 = vrot.lane.b32.xlu1 %v36_v0, %s214_s4  ;;  %38 = vrot.lane.b32.xlu0 %v36_v0, %s215_s5  ;;  %v88_v9 = vld [vmem:[#allocation2 + $0x1] ss:$2 sm:$0x3]  ;;  %v51_v10 = vld [vmem:[#allocation2] ss:$2 sm:$0x3] }
  0x27   :  { %v54_v3 = vshrl.u32 %v42_v2, 7  ;;  %v43_v4 = vand.u32 127, %v42_v2  ;;  %s216_s6 = smov [#allocation7]  }
  0x28   :  { %s121_s7 = sshll.u32 %s216_s6, 4  ;;  %s122_s7 = int_to_ptr.vmem [resolvable:$true] %s121_s7 }
  0x29   :  { %v55_v7 = vsub.s32 0, %v54_v3  ;;  %v59_v8 = vsub.s32 1, %v54_v3  ;;  %vm80_vm0 = vcmp.lt.s32.totalorder %v43_v4, 112  ;;  %vm44_vm1 = vcmp.lt.s32.totalorder %v43_v4, 127  ;;  %s184_s10 = scalar_lea.vmem %s122_s7, 128  ;;  %p189_p3 = scmp.lt.s32.totalorder %s122_s7, %s122_s7 }
  0x2a   :  { %78 = vrot.lane.b32.xlu1 %v37_v1, %s214_s4  ;;  %40 = vrot.lane.b32.xlu0 %v37_v1, %s215_s5  ;;  %p185_p2 = scmp.ne.s32.totalorder %s122_s7, %s184_s10  ;;  %p190_p4 = scmp.lt.s32.totalorder %s184_s10, %s184_s10 }
  0x2b   :  { %v93_v13 = vrot.slane %v88_v9, %v55_v7  ;;  %v97_v14 = vrot.slane %v88_v9, %v59_v8  ;;  %v56_v15 = vrot.slane %v51_v10, %v55_v7  ;;  %v60_v24 = vrot.slane %v51_v10, %v59_v8 }
  0x2c   :  { %p191_p5 = por %p190_p4, %p189_p3 }
  0x2e   :  { %p192_p6 = pnand %p191_p5, %p185_p2 }
  0x98   :  { %v77_v5 = vpop.permute.xlu1 %76  ;;  %v39_v6 = vpop.permute.xlu0 %38 }
  0x9c   :  { %v79_v11 = vpop.permute.xlu1 %78  ;;  %v41_v12 = vpop.permute.xlu0 %40 }
  0x9d   :  { %v81_v16 = vsel %vm80_vm0, %v77_v5, %v79_v11  ;;  %v82_v17 = vsel %vm80_vm0, %v79_v11, %v77_v5  ;;  %v45_v18 = vsel %vm44_vm1, %v39_v6, %v41_v12  ;;  %v46_v19 = vsel %vm44_vm1, %v41_v12, %v39_v6 }
  0x9e   :  { %v83_v20 = vsub.f32 %v36_v0, %v81_v16  ;;  %v84_v21 = vsub.f32 %v37_v1, %v82_v17  ;;  %v47_v22 = vsub.f32 %v36_v0, %v45_v18  ;;  %v48_v23 = vsub.f32 %v37_v1, %v46_v19 }
  0xa0   :  { %v85_v25 = vand.u32 2147483647, %v83_v20  ;;  %v86_v26 = vand.u32 2147483647, %v84_v21  ;;  %v49_v27 = vand.u32 2147483647, %v47_v22 }
  0xa1   :  { %v50_v28 = vand.u32 2147483647, %v48_v23 }
  0xa2   :  { %v100_v29 = vmul.f32 %v93_v13, %v85_v25  ;;  %v101_v30 = vmul.f32 %v97_v14, %v86_v26  ;;  %v63_v31 = vmul.f32 %v56_v15, %v49_v27 }
  0xa3   :  { %v64_v32 = vmul.f32 %v60_v24, %v50_v28 }
  0xa4   :  { %v102_v33 = vadd.f32 %v101_v30, %v100_v29 }
  0xa5   :  { %v65_v34 = vadd.f32 %v64_v32, %v63_v31 }
  0xa6   :  { %103 = vadd.xlane.f32.xlu1 %v102_v33 }
  0xa7   :  { %66 = vadd.xlane.f32.xlu0 %v65_v34 }
 0x133   :  { %v104_v35 = vpop.xlane.xlu1 %103 }
 0x134   :  { %v105_v36 = vrot.slane %v104_v35, 4  ;;  %v67_v37 = vpop.xlane.xlu0 %66 }
 0x135   :  { %v68_v38 = vrot.slane %v67_v37, 4 }
 0x136   :  { %v106_v39 = vadd.f32 %v105_v36, %v104_v35 }
 0x137   :  { %v69_v40 = vadd.f32 %v68_v38, %v67_v37 }
 0x138   :  { %v107_v41 = vrot.slane %v106_v39, 2 }
 0x139   :  { %v70_v42 = vrot.slane %v69_v40, 2 }
 0x13a   :  { %v108_v43 = vadd.f32 %v107_v41, %v106_v39 }
 0x13b   :  { %v71_v44 = vadd.f32 %v70_v42, %v69_v40 }
 0x13c   :  { %v109_v45 = vrot.slane %v108_v43, 1 }
 0x13d   :  { %v72_v46 = vrot.slane %v71_v44, 1 }
 0x13e   :  { %v110_v47 = vadd.f32 %v109_v45, %v108_v43 }
 0x13f   :  { %v73_v48 = vadd.f32 %v72_v46, %v71_v44 }
 0x141   :  { %131 = vpush %v73_v48 }
 0x142   :  { %133 = vpush %v110_v47 }
 0x172   :  { %s132_s1 = spop %131 }
 0x173   :  { %s134_s8 = spop %133 }
 0x174   :  { %s112_s9 = sadd.f32 %s134_s8, %s132_s1 }
 0x176   :  { %v113_v49 = vstv %s112_s9 }
 0x177   :  { %114 = vst [vmem:[#allocation7] sm:$0xff] %v113_v49 }
 0x178   :  { %195 = shalt.err (!%p192_p6)
}
 0x179   :  { %s196_s13 = scalar_lea.hbm %s270_s2, 128 }
 0x17a   :  { %p197_p7 = scmp.ne.s32.totalorder %s270_s2, %s196_s13  ;;  %p200_p8 = scmp.lt.u32.totalorder %s196_s13, %s270_s2 }
 0x17c   :  { %p202_p9 = pnand %p200_p8, %p197_p7 }
 0x17e   :  { %205 = shalt.err (!%p202_p9)
}
 0x17f   :  { %124 = dma.vmem_to_hbm [thread:$0]  %s122_s7, 128, %s270_s2, [#allocation4]  }
 0x180   :  { %210 = dma.done.wait [#allocation4], 128  }
 0x181   :  { %211 = vsyncadd [#allocation4], 4294967168 }
 0x182   :  { %128 = vsyncpa [#allocation3], 1 }
 0x183   :  { %129 = vsyncpa [#allocation6], 1 }
 0x184   :  { %130 = vsyncpa [#allocation4], 1 }

</bundles_post_ra>
